<compile_context>
chip_gen: v7x
topology: tpu7x:2x2x1
jax: 0.10.0
libtpu: 0.0.40
codegen_flags: <defaults>
</compile_context>

<pallas_src>
import jax
import jax.numpy as jnp
from jax import lax
from jax.experimental import pallas as pl
from jax.experimental.pallas import tpu as pltpu


def _filter_kernel(obj_ref, txt_ref, wt_ref, b_ref, filt_ref, wts_ref):
    # Block shapes (one batch element per grid step):
    #   obj_ref : (1, N_obj, D_obj)   txt_ref : (1, D_txt, 1)
    #   wt_ref  : (D_txt, D_obj)      b_ref   : (1, D_obj)
    #   filt_ref: (1, N_obj, D_obj)   wts_ref : (1, 1, N_obj)
    obj = obj_ref[0]          # (N_obj, D_obj) f32
    txt = txt_ref[0]          # (D_txt, 1)     f32  (text feature as a column)
    wt = wt_ref[...]          # (D_txt, D_obj) f32  (pre-transposed nn.Linear weight)
    b = b_ref[...]            # (1, D_obj)     f32

    # query_vec = text_proj(text_feat): VPU lane-broadcast multiply + sublane
    # reduce.  Avoids both an in-kernel weight transpose and a (1,D_txt)x
    # (D_txt,D_obj) MXU matmul that would be pure fill/drain latency here.
    query = jnp.sum(wt * txt, axis=0, keepdims=True) + b           # (1, D_obj)

    # scores = (object_feats * query_vec).sum(dim=1), in two layouts so no
    # in-kernel transpose/relayout is ever needed:
    #   * lane-dense row (1, N_obj): lane-axis softmax reductions + dense store
    #   * column (N_obj, 1): lane-broadcast against object rows for re-weighting
    scores_row = lax.dot_general(                                   # (1, N_obj)
        query, obj, dimension_numbers=(((1,), (1,)), ((), ())),     # trans_b on MXU
        preferred_element_type=jnp.float32)
    scores_col = jnp.sum(obj * query, axis=1, keepdims=True)        # (N_obj, 1)

    # Numerically stable softmax over objects.
    m = jnp.max(scores_row, axis=1, keepdims=True)                  # (1, 1)
    e_row = jnp.exp(scores_row - m)                                 # (1, N_obj)
    inv_denom = pl.reciprocal(jnp.sum(e_row, axis=1, keepdims=True),
                              approx=False)                         # (1, 1)
    wts_row = e_row * inv_denom                                     # (1, N_obj)
    wts_col = jnp.exp(scores_col - m) * inv_denom                   # (N_obj, 1)

    # filtered_feats = weights.unsqueeze(1) * object_feats
    filt_ref[0] = (wts_col * obj).astype(filt_ref.dtype)
    wts_ref[0] = wts_row.astype(wts_ref.dtype)


@jax.jit
def filter_module_batched(object_feats, text_feats, weight, bias):
    """Batched FilterModule forward.

    object_feats: (B, N_obj, D_obj); text_feats: (B, D_txt);
    weight: (D_obj, D_txt) (PyTorch nn.Linear layout); bias: (D_obj,).
    Returns (filtered_feats (B, N_obj, D_obj), weights (B, N_obj)).
    """
    bsz, n_obj, d_obj = object_feats.shape
    d_txt = text_feats.shape[-1]

    # Layout plumbing in the wrapper (free relative to in-kernel XLU work).
    wt = weight.T                                # (D_txt, D_obj)
    txt = text_feats.reshape(bsz, d_txt, 1)      # text feature as a column
    b2 = bias.reshape(1, d_obj)

    filt, wts = pl.pallas_call(
        _filter_kernel,
        out_shape=(
            jax.ShapeDtypeStruct((bsz, n_obj, d_obj), object_feats.dtype),
            jax.ShapeDtypeStruct((bsz, 1, n_obj), jnp.float32),
        ),
        grid=(bsz,),
        in_specs=[
            pl.BlockSpec((1, n_obj, d_obj), lambda b: (b, 0, 0)),
            pl.BlockSpec((1, d_txt, 1), lambda b: (b, 0, 0)),
            pl.BlockSpec((d_txt, d_obj), lambda b: (0, 0)),
            pl.BlockSpec((1, d_obj), lambda b: (0, 0)),
        ],
        out_specs=(
            pl.BlockSpec((1, n_obj, d_obj), lambda b: (b, 0, 0)),
            pl.BlockSpec((1, 1, n_obj), lambda b: (b, 0, 0)),
        ),
        compiler_params=pltpu.CompilerParams(
            dimension_semantics=("parallel",),   # v7x: shard batch over both TCs
        ),
    )(object_feats, txt, wt, b2)

    # TODO(synk): for large N_obj/D_obj (real detector outputs), tile N_obj with a
    # second grid axis + online softmax and re-derive tile sizes for v7x's 64 MiB VMEM.
    return filt, wts.reshape(bsz, n_obj)


def filter_module(object_feats, text_feat, weight, bias):
    """Unbatched forward matching FilterModule.forward.
    object_feats: (N_obj, D_obj); text_feat: (D_txt,). Returns (filtered, weights)."""
    filt, wts = filter_module_batched(object_feats[None], text_feat[None],
                                      weight, bias)
    return filt[0], wts[0]


def _reference(object_feats, text_feat, weight, bias):
    query = text_feat @ weight.T + bias
    scores = jnp.sum(object_feats * query[None, :], axis=1)
    weights = jax.nn.softmax(scores, axis=0)
    return weights[:, None] * object_feats, weights


if __name__ == "__main__":
    N_OBJ, D_OBJ, D_TXT, BATCH = 8, 32, 16, 4

    key = jax.random.PRNGKey(0)
    k1, k2, k3, k4 = jax.random.split(key, 4)

    object_feats_b = jax.random.normal(k1, (BATCH, N_OBJ, D_OBJ), dtype=jnp.float32)
    text_feats_b = jax.random.normal(k2, (BATCH, D_TXT), dtype=jnp.float32)
    # Deterministic "nn.Linear(d_txt, d_obj)" params: weight (d_obj, d_txt), bias (d_obj,)
    weight = jax.random.normal(k3, (D_OBJ, D_TXT), dtype=jnp.float32) * (1.0 / jnp.sqrt(D_TXT))
    bias = jax.random.normal(k4, (D_OBJ,), dtype=jnp.float32) * 0.01

    # Batched run: one kernel launch, grid=(B,).
    filt_b, wts_b = filter_module_batched(object_feats_b, text_feats_b, weight, bias)
    jax.block_until_ready((filt_b, wts_b))

    ref_filt_b, ref_wts_b = jax.vmap(_reference, in_axes=(0, 0, None, None))(
        object_feats_b, text_feats_b, weight, bias)
    assert filt_b.shape == (BATCH, N_OBJ, D_OBJ) and wts_b.shape == (BATCH, N_OBJ)
    assert jnp.allclose(filt_b, ref_filt_b, atol=1e-5, rtol=1e-5)
    assert jnp.allclose(wts_b, ref_wts_b, atol=1e-5, rtol=1e-5)

    # Unbatched (module-equivalent) run.
    filt, wts = filter_module(object_feats_b[0], text_feats_b[0], weight, bias)
    jax.block_until_ready((filt, wts))
    ref_filt, ref_wts = _reference(object_feats_b[0], text_feats_b[0], weight, bias)
    assert filt.shape == (N_OBJ, D_OBJ) and wts.shape == (N_OBJ,)
    assert jnp.allclose(filt, ref_filt, atol=1e-5, rtol=1e-5)
    assert jnp.allclose(wts, ref_wts, atol=1e-5, rtol=1e-5)

    print("KERNEL_OK")
</pallas_src>

<mosaic_0001>
module attributes {stable_mosaic.version = 11 : i64} {
  func.func @_filter_kernel(%arg0: i32, %arg1: memref<1x8x32xf32, #tpu.memory_space<vmem>>, %arg2: memref<1x16x1xf32, #tpu.memory_space<vmem>>, %arg3: memref<16x32xf32, #tpu.memory_space<vmem>>, %arg4: memref<1x32xf32, #tpu.memory_space<vmem>>, %arg5: memref<1x8x32xf32, #tpu.memory_space<vmem>>, %arg6: memref<1x1x8xf32, #tpu.memory_space<vmem>>) attributes {dimension_semantics = [#tpu.dimension_semantics<parallel>], iteration_bounds = array<i64: 4>, scalar_prefetch = 0 : i64, scratch_operands = 0 : i64, tpu.core_type = #tpu.core_type<tc>, window_params = [{transform_indices = @transform_0, window_bounds = array<i64: 1, 8, 32>}, {transform_indices = @transform_1, window_bounds = array<i64: 1, 16, 1>}, {pipeline_mode = #tpu.pipeline_mode<synchronous>, transform_indices = @transform_2, window_bounds = array<i64: 16, 32>}, {pipeline_mode = #tpu.pipeline_mode<synchronous>, transform_indices = @transform_3, window_bounds = array<i64: 1, 32>}, {transform_indices = @transform_4, window_bounds = array<i64: 1, 8, 32>}, {transform_indices = @transform_5, window_bounds = array<i64: 1, 1, 8>}]} {
    %c0 = arith.constant 0 : index
    %c0_0 = arith.constant 0 : index
    %c0_1 = arith.constant 0 : index
    %0 = vector.load %arg1[%c0, %c0_0, %c0_1] : memref<1x8x32xf32, #tpu.memory_space<vmem>>, vector<1x8x32xf32>
    %1 = vector.shape_cast %0 : vector<1x8x32xf32> to vector<8x32xf32>
    %c0_2 = arith.constant 0 : index
    %c0_3 = arith.constant 0 : index
    %c0_4 = arith.constant 0 : index
    %2 = vector.load %arg2[%c0_2, %c0_3, %c0_4] : memref<1x16x1xf32, #tpu.memory_space<vmem>>, vector<1x16x1xf32>
    %3 = vector.shape_cast %2 : vector<1x16x1xf32> to vector<16x1xf32>
    %c0_5 = arith.constant 0 : index
    %c0_6 = arith.constant 0 : index
    %4 = vector.load %arg3[%c0_5, %c0_6] : memref<16x32xf32, #tpu.memory_space<vmem>>, vector<16x32xf32>
    %c0_7 = arith.constant 0 : index
    %c0_8 = arith.constant 0 : index
    %5 = vector.load %arg4[%c0_7, %c0_8] : memref<1x32xf32, #tpu.memory_space<vmem>>, vector<1x32xf32>
    %6 = vector.broadcast %3 : vector<16x1xf32> to vector<16x32xf32>
    %7 = arith.mulf %4, %6 : vector<16x32xf32>
    %cst = arith.constant dense<0.000000e+00> : vector<32xf32>
    %8 = vector.multi_reduction <add>, %7, %cst [0] : vector<16x32xf32> to vector<32xf32>
    %9 = vector.shape_cast %8 : vector<32xf32> to vector<1x32xf32>
    %10 = arith.addf %9, %5 : vector<1x32xf32>
    %cst_9 = arith.constant dense<0.000000e+00> : vector<1x8xf32>
    %11 = tpu.matmul %10, %1, %cst_9 {dimension_numbers = #tpu.dot_dimension_numbers<[1], [1], [0], [0], [0, 0, 1, 0], [], []>} : vector<1x32xf32>, vector<8x32xf32>, vector<1x8xf32> -> vector<1x8xf32>
    %12 = vector.broadcast %10 : vector<1x32xf32> to vector<8x32xf32>
    %13 = arith.mulf %1, %12 : vector<8x32xf32>
    %cst_10 = arith.constant dense<0.000000e+00> : vector<8xf32>
    %14 = vector.multi_reduction <add>, %13, %cst_10 [1] : vector<8x32xf32> to vector<8xf32>
    %15 = vector.shape_cast %14 : vector<8xf32> to vector<8x1xf32>
    %cst_11 = arith.constant dense<0xFF800000> : vector<1xf32>
    %16 = vector.multi_reduction <maximumf>, %11, %cst_11 [1] : vector<1x8xf32> to vector<1xf32>
    %17 = vector.shape_cast %16 : vector<1xf32> to vector<1x1xf32>
    %18 = vector.broadcast %17 : vector<1x1xf32> to vector<1x8xf32>
    %19 = arith.subf %11, %18 : vector<1x8xf32>
    %20 = math.exp %19 : vector<1x8xf32>
    %cst_12 = arith.constant dense<0.000000e+00> : vector<1xf32>
    %21 = vector.multi_reduction <add>, %20, %cst_12 [1] : vector<1x8xf32> to vector<1xf32>
    %22 = vector.shape_cast %21 : vector<1xf32> to vector<1x1xf32>
    %23 = tpu.reciprocal %22 : vector<1x1xf32> -> vector<1x1xf32>
    %24 = vector.broadcast %23 : vector<1x1xf32> to vector<1x8xf32>
    %25 = arith.mulf %20, %24 : vector<1x8xf32>
    %26 = vector.broadcast %17 : vector<1x1xf32> to vector<8x1xf32>
    %27 = arith.subf %15, %26 : vector<8x1xf32>
    %28 = math.exp %27 : vector<8x1xf32>
    %29 = vector.broadcast %23 : vector<1x1xf32> to vector<8x1xf32>
    %30 = arith.mulf %28, %29 : vector<8x1xf32>
    %31 = vector.broadcast %30 : vector<8x1xf32> to vector<8x32xf32>
    %32 = arith.mulf %31, %1 : vector<8x32xf32>
    %c0_13 = arith.constant 0 : index
    %c0_14 = arith.constant 0 : index
    %c0_15 = arith.constant 0 : index
    %33 = vector.load %arg5[%c0_13, %c0_14, %c0_15] : memref<1x8x32xf32, #tpu.memory_space<vmem>>, vector<1x8x32xf32>
    %34 = vector.shape_cast %33 : vector<1x8x32xf32> to vector<8x32xf32>
    %35 = vector.shape_cast %32 : vector<8x32xf32> to vector<1x8x32xf32>
    tpu.vector_store %arg5[%c0_13, %c0_14, %c0_15], %35 {strides = array<i32>} : memref<1x8x32xf32, #tpu.memory_space<vmem>>, vector<1x8x32xf32>,
    %c0_16 = arith.constant 0 : index
    %c0_17 = arith.constant 0 : index
    %c0_18 = arith.constant 0 : index
    %36 = vector.load %arg6[%c0_16, %c0_17, %c0_18] : memref<1x1x8xf32, #tpu.memory_space<vmem>>, vector<1x1x8xf32>
    %37 = vector.shape_cast %36 : vector<1x1x8xf32> to vector<1x8xf32>
    %38 = vector.shape_cast %25 : vector<1x8xf32> to vector<1x1x8xf32>
    tpu.vector_store %arg6[%c0_16, %c0_17, %c0_18], %38 {strides = array<i32>} : memref<1x1x8xf32, #tpu.memory_space<vmem>>, vector<1x1x8xf32>,
    return
  }
  func.func @transform_0(%arg0: i32) -> (i32, i32, i32) {
    %c0_i32 = arith.constant 0 : i32
    %c0_i32_0 = arith.constant 0 : i32
    %c0_i32_1 = arith.constant 0 : i32
    return %arg0, %c0_i32, %c0_i32_0 : i32, i32, i32
  }
  func.func @transform_1(%arg0: i32) -> (i32, i32, i32) {
    %c0_i32 = arith.constant 0 : i32
    %c0_i32_0 = arith.constant 0 : i32
    %c0_i32_1 = arith.constant 0 : i32
    return %arg0, %c0_i32, %c0_i32_0 : i32, i32, i32
  }
  func.func @transform_2(%arg0: i32) -> (i32, i32) {
    %c0_i32 = arith.constant 0 : i32
    %c0_i32_0 = arith.constant 0 : i32
    %c0_i32_1 = arith.constant 0 : i32
    return %c0_i32, %c0_i32_0 : i32, i32
  }
  func.func @transform_3(%arg0: i32) -> (i32, i32) {
    %c0_i32 = arith.constant 0 : i32
    %c0_i32_0 = arith.constant 0 : i32
    %c0_i32_1 = arith.constant 0 : i32
    return %c0_i32, %c0_i32_0 : i32, i32
  }
  func.func @transform_4(%arg0: i32) -> (i32, i32, i32) {
    %c0_i32 = arith.constant 0 : i32
    %c0_i32_0 = arith.constant 0 : i32
    %c0_i32_1 = arith.constant 0 : i32
    return %arg0, %c0_i32, %c0_i32_0 : i32, i32, i32
  }
  func.func @transform_5(%arg0: i32) -> (i32, i32, i32) {
    %c0_i32 = arith.constant 0 : i32
    %c0_i32_0 = arith.constant 0 : i32
    %c0_i32_1 = arith.constant 0 : i32
    return %arg0, %c0_i32, %c0_i32_0 : i32, i32, i32
  }
}

</mosaic_0001>

<bundles_post_ra>
// kernel: filter_module_batched.1
= control target key start
LH: loop header
LB: loop body
LE: loop exit
PB: predicated region body
PF: predicated region fallthrough
CT: control target
= control target key end

     0   :  { %11 = vsyncpa [#allocation3], 0  ;;  %s897_s0 = inlined_call_operand.vmem [shape: f32[4,8,32], index: 0, kind: input, shape index: {}]   ;;  %s898_s1 = inlined_call_operand.vmem [shape: f32[4,16,1], index: 1, kind: input, shape index: {}]   ;;  %s899_s2 = inlined_call_operand.vmem [shape: f32[16,32], index: 2, kind: input, shape index: {}]   ;;  %s900_s3 = inlined_call_operand.vmem [shape: f32[1,32], index: 3, kind: input, shape index: {}]   ;;  %s901_s4 = inlined_call_operand.hbm [shape: f32[4,8,32], index: 4, kind: output, shape index: {0}]   ;;  %s902_s5 = inlined_call_operand.hbm [shape: f32[4,1,8], index: 5, kind: output, shape index: {1}]  }
   0x1   :  { %13 = vsyncpa [#allocation3 + $0x1], 0 }
   0x2   :  { %14 = vsyncpa [#allocation5], 0 }
   0x3   :  { %16 = vsyncpa [#allocation5 + $0x1], 0  ;;  %s728_s18 = smov 0   ;;  %s730_s19 = smov 0  }
   0x4   :  { %s732_s20 = smov 0   ;;  %s734_s21 = smov 0  }
   0x5 LB: > { %s749_s22 = sadd.s32 4294967295, %s691_s21   ;;  %s520_s23 = sadd.s32 4294967294, %s691_s21   ;;  %s691_s21 = sphi %s734_s21, %s908_s21   ;;  %s687_s20 = sphi %s732_s20, %s907_s20   ;;  %s683_s19 = sphi %s730_s19, %s906_s19   ;;  %s679_s18 = sphi %s728_s18, %s905_s18  }
   0x6   : > { %s753_s24 = sadd.s32 1, %s691_s21   ;;  %s123_s25 = sadd.s32 1, %s687_s20 }
   0x7   : > { %s120_s26 = ssub.s32 %s691_s21, %s753_s24  ;;  %p133_p0 = scmp.ne.s32.totalorder %s687_s20, %s683_s19 }
   0x8   : > { %p121_p1 = scmp.eq.s32.totalorder %s120_s26, 0  ;;  %p134_p2 = scmp.eq.s32.totalorder %s749_s22, 3 }
   0x9   : > { %p139_p3 = scmp.ne.s32.totalorder %s683_s19, %s679_s18  ;;  %p140_p4 = scmp.eq.s32.totalorder %s520_s23, 3 }
   0xa   : > { %s764_s27 = scalar_select %p121_p1, %s687_s20, %s123_s25  }
   0xb   : > { %p766_p5 = por %p134_p2, %p133_p0  ;;  %p770_p6 = por %p140_p4, %p139_p3 }
   0xc   : > { %p523_p7 = scmp.ge.s32.totalorder %s691_s21, 1  ;;  %p205_p8 = scmp.lt.s32.totalorder %s691_s21, 5 }
   0xe   : > { %p206_p9 = pnand %p523_p7, %p205_p8 }
   0xf   : > { %p241_p10 = scmp.lt.s32.totalorder (!%p206_p9), %s749_s22, 3  ;;  %v693_v0 = vmov (!%p206_p9), 0   ;;  %v694_v3 = vmov (!%p206_p9), 0.0   ;;  %vm695_vm0 = vmmov (!%p206_p9), 0   ;;  %vm268_vm1 = vcmask (!%p206_p9), 261120   ;;  %v253_v5 = vld [vmem:[%s899_s2] sm:$0xff] (!%p206_p9) }
  0x10   : > { %209 = sbr.rel (%p206_p9) target bundleno = 742 (0x2e6), region = 36  ;;  %590 = vset.pattern.permute.xlu0 (!%p206_p9), %v693_v0  ;;  %538 = vmatprep.subr.mxu0 (!%p206_p9), %v694_v3  ;;  %v254_v7 = vld [vmem:[%s899_s2 + $0x8] sm:$0xff] (!%p206_p9)  ;;  %v255_v19 = vld [vmem:[%s900_s3] sm:$0x1] (!%p206_p9)  ;;  %v355_v22 = vlaneseq (!%p206_p9)  ;;  %vm363_vm2 = vcmask (!%p206_p9), 57344   ;;  %s805_s26 = sand.u32 (!%p206_p9), 1, %s683_s19  }
  0x11   : > { %540 = vmatprep.mubr.msk.f32.mxu0 (!%p206_p9), %vm695_vm0, %v694_v3  ;;  %s240_s7 = scalar_lea.vmem (!%p206_p9), [#allocation4], %s805_s26  ;;  %s531_s12 = sshll.u32 (!%p206_p9), %s749_s22, 7 }
  0x12   : > { %v356_v23 = vshrl.u32 (!%p206_p9), %v355_v22, 7  ;;  %s421_s8 = sshll.u32 (!%p206_p9), %s240_s7, 4  ;;  %s396_s15 = scalar_lea.sflag (!%p206_p9), [#allocation5], %s805_s26  ;;  %s815_s8 = int_to_ptr.vmem [resolvable:$true] %s421_s8 }
  0x13   : > { %s597_s16 = scalar_lea.vmem (!%p206_p9), %s815_s8, 16  ;;  %s696_s17 = smov (!%p206_p9), [#allocation4]  }
  0x14   : > { %v357_v24 = vsub.s32 (!%p206_p9), 0, %v356_v23  ;;  %p598_p11 = scmp.ne.s32.totalorder (!%p206_p9), %s815_s8, %s597_s16  ;;  %s601_s23 = sshll.u32 (!%p206_p9), %s696_s17, 4  ;;  %s602_s23 = int_to_ptr.vmem [resolvable:$false] %s601_s23 }
  0x15   : > { %s603_s25 = scalar_lea.vmem (!%p206_p9), %s602_s23, 32  ;;  %p604_p0 = scmp.lt.s32.totalorder (!%p206_p9), %s815_s8, %s602_s23 }
  0x16   : > { %p599_p12 = pnand (!%p206_p9), %p598_p11, %p766_p5  ;;  %p605_p1 = scmp.lt.s32.totalorder (!%p206_p9), %s603_s25, %s597_s16 }
  0x17   : > { %s242_s30 = scalar_select %p241_p10, %s749_s22, 3 }
  0x18   : > { %p600_p13 = pneg %p599_p12  ;;  %p606_p2 = por %p605_p1, %p604_p0 }
  0x19   : > { %s535_s6 = sshll.u32 %s242_s30, 4  ;;  %s525_s10 = sshll.u32 %s242_s30, 3 }
  0x1a   : > { %s249_s9 = scalar_lea.vmem %s898_s1, %s535_s6  ;;  %s244_s13 = scalar_lea.vmem %s897_s0, %s525_s10 }
  0x1b   : > { %v251_v1 = vld [vmem:[%s249_s9] sm:$0xff]  ;;  %v252_v2 = vld [vmem:[%s249_s9 + $0x8] sm:$0xff]  ;;  %s524_s30 = sshll.u32 %s805_s26, 3  ;;  %s532_s6 = sshll.u32 %s749_s22, 4 }
  0x1c   : > { %258 = vperm.xlu0 %590, %v251_v1   ;;  %v784_v4 = vld [vmem:[%s244_s13] sm:$0xff]  ;;  %s813_s11 = scalar_lea.hbm %s902_s5, %s532_s6  ;;  %s818_s13 = scalar_lea.vmem [#allocation2], %s524_s30 }
  0x1d   : > { %539 = vmatpush3.xpose.msk.msra.mxu0 %vm268_vm1, %v784_v4  ;;  %s408_s14 = sshll.u32 %s818_s13, 4  ;;  %p607_p3 = pnand %p606_p2, %p600_p13  ;;  %s854_s14 = int_to_ptr.vmem [resolvable:$true] %s408_s14 }
  0x20   : > { %263 = vperm.xlu0 %590, %v252_v2  }
  0x9b   : > { %v259_v6 = vpop.permute.xlu0 %258 }
  0x9c   : > { %v266_v8 = vmul.f32 %v259_v6, %v253_v5 }
  0x9e   : > { %v269_v11 = vsel %vm268_vm1, %v266_v8, 0.0 }
  0x9f   : > { %v264_v9 = vpop.permute.xlu0 %263 }
  0xa0   : > { %v267_v10 = vmul.f32 %v264_v9, %v254_v7 }
  0xa2   : > { %v270_v12 = vsel %vm268_vm1, %v267_v10, 0.0 }
  0xa3   : > { %v271_v13 = vadd.f32 %v270_v12, %v269_v11 }
  0xa5   : > { %v272_v14 = vrot.slane %v271_v13, 4 }
  0xa7   : > { %v273_v15 = vadd.f32 %v272_v14, %v271_v13 }
  0xa9   : > { %v274_v16 = vrot.slane %v273_v15, 2 }
  0xab   : > { %v275_v17 = vadd.f32 %v274_v16, %v273_v15 }
  0xad   : > { %v276_v18 = vrot.slane %v275_v17, 1 }
  0xaf   : > { %v277_v20 = vadd.f32 %v276_v18, %v275_v17 }
  0xb1   : > { %v278_v21 = vadd.f32 %v277_v20, %v255_v19 }
  0xb3   : > { %541 = vmatmul.mubr.msk.f32.vlgmr.msra.gmra.mrb[0].mxu0 %vm268_vm1, %v278_v21  ;;  %v358_v25 = vrot.slane %v278_v21, %v357_v24 }
  0xb5   : > { %v359_v29 = vmul.f32 %v358_v25, %v784_v4 }
  0xb7   : > { %v360_v30 = vsel %vm268_vm1, %v359_v29, 0.0 }
 0x186   : > { %v351_v26 = vpop.f32.mrb[0].mxu0 }
 0x187   : > { %v542_v27 = vpop.f32.mrb[1].mxu0  ;;  %v364_v28 = vsel %vm363_vm2, %v351_v26, -inf }
 0x188   : > { %365 = vmax.xlane.f32.xlu1 %v364_v28 }
 0x18c   : > { %361 = vadd.xlane.f32.xlu1 %v360_v30 }
 0x215   : > { %v366_v31 = vpop.xlane.xlu1 %365 }
 0x216   : > { %v367_v32 = vsub.f32 %v351_v26, %v366_v31  ;;  %v378_v37 = vrot.slane %v366_v31, %v357_v24 }
 0x218   : > { %v368_v33 = vmul.f32 1.442695, %v367_v32 }
 0x219   : > { %v362_v36 = vpop.xlane.xlu1 %361 }
 0x21a   : > { %591 = vpow2.f32 %v368_v33  ;;  %v379_v38 = vsub.f32 %v362_v36, %v378_v37 }
 0x21c   : > { %v380_v39 = vmul.f32 1.442695, %v379_v38 }
 0x224   : > { %v592_v34 = vpop.eup %591 }
 0x225   : > { %v370_v35 = vsel %vm363_vm2, %v592_v34, 0.0 }
 0x226   : > { %371 = vadd.xlane.f32.xlu0 %v370_v35 }
 0x2b3   : > { %v372_v40 = vpop.xlane.xlu0 %371 }
 0x2b4   : > { %593 = vrcp.f32 %v372_v40 }
 0x2b5   : > { %595 = vpow2.f32 %v380_v39 }
 0x2be   : > { %v594_v41 = vpop.eup %593 }
 0x2bf   : > { %v385_v42 = vrot.slane %v594_v41, %v357_v24  ;;  %v374_v43 = vmul.f32 %v594_v41, %v592_v34  ;;  %v596_v44 = vpop.eup %595 }
 0x2c1   : > { %v386_v45 = vmul.f32 %v596_v44, %v385_v42  ;;  %389 = vst.msk [vmem:[%s240_s7] sm:$0x1] %vm363_vm2, %v374_v43 }
 0x2c2   : > { %610 = shalt.err (!%p607_p3)
}
 0x2c3   : > { %s611_s30 = scalar_lea.hbm %s813_s11, 16  ;;  %s615_s9 = scalar_lea.hbm %s902_s5, 64 }
 0x2c4   : > { %p612_p4 = scmp.ne.s32.totalorder %s813_s11, %s611_s30  ;;  %p616_p9 = scmp.lt.u32.totalorder %s813_s11, %s902_s5 }
 0x2c5   : > { %p617_p10 = scmp.lt.u32.totalorder %s615_s9, %s611_s30  ;;  %p619_p12 = scmp.lt.u32.totalorder %s611_s30, %s813_s11 }
 0x2c6   : > { %p613_p7 = pnand %p612_p4, %p766_p5 }
 0x2c7   : > { %p618_p11 = por %p617_p10, %p616_p9 }
 0x2c8   : > { %p614_p8 = pneg %p613_p7 }
 0x2c9   : > { %p620_p13 = por %p619_p12, %p618_p11 }
 0x2cb   : > { %p621_p0 = pnand %p620_p13, %p614_p8 }
 0x2cd   : > { %624 = shalt.err (!%p621_p0)
}
 0x2ce   : > { %544 = dma.vmem_to_hbm [thread:$0]  (%p766_p5), %s815_s8, 16, %s813_s11, %s396_s15   ;;  %v387_v46 = vmul.f32 %v386_v45, %v784_v4 }
 0x2cf   : > { %s850_s25 = scalar_lea.hbm %s901_s4, %s531_s12  ;;  %s391_s30 = scalar_lea.sflag [#allocation3], %s805_s26 }
 0x2d0   : > { %388 = vst.msk [vmem:[%s818_s13] sm:$0xff] %vm268_vm1, %v387_v46  ;;  %s625_s6 = scalar_lea.vmem %s854_s14, 128  ;;  %s697_s22 = smov [#allocation2]  }
 0x2d1   : > { %p626_p1 = scmp.ne.s32.totalorder %s854_s14, %s625_s6  ;;  %s629_s8 = sshll.u32 %s697_s22, 4  ;;  %s630_s8 = int_to_ptr.vmem [resolvable:$false] %s629_s8 }
 0x2d2   : > { %s631_s11 = scalar_lea.vmem %s630_s8, 256  ;;  %p632_p4 = scmp.lt.s32.totalorder %s854_s14, %s630_s8 }
 0x2d3   : > { %p627_p2 = pnand %p626_p1, %p766_p5  ;;  %p633_p7 = scmp.lt.s32.totalorder %s631_s11, %s625_s6 }
 0x2d5   : > { %p628_p3 = pneg %p627_p2  ;;  %p634_p8 = por %p633_p7, %p632_p4 }
 0x2d7   : > { %p635_p9 = pnand %p634_p8, %p628_p3 }
 0x2d9   : > { %638 = shalt.err (!%p635_p9)
}
 0x2da   : > { %s639_s26 = scalar_lea.hbm %s850_s25, 128  ;;  %s643_s15 = scalar_lea.hbm %s901_s4, 512 }
 0x2db   : > { %p640_p10 = scmp.ne.s32.totalorder %s850_s25, %s639_s26  ;;  %p644_p13 = scmp.lt.u32.totalorder %s850_s25, %s901_s4 }
 0x2dc   : > { %p645_p0 = scmp.lt.u32.totalorder %s643_s15, %s639_s26  ;;  %p647_p2 = scmp.lt.u32.totalorder %s639_s26, %s850_s25 }
 0x2dd   : > { %p641_p11 = pnand %p640_p10, %p766_p5 }
 0x2de   : > { %p646_p1 = por %p645_p0, %p644_p13 }
 0x2df   : > { %p642_p12 = pneg %p641_p11 }
 0x2e0   : > { %p648_p3 = por %p647_p2, %p646_p1 }
 0x2e2   : > { %p649_p4 = pnand %p648_p3, %p642_p12 }
 0x2e4   : > { %652 = shalt.err (!%p649_p4)
}
 0x2e5   : > { %543 = dma.vmem_to_hbm [thread:$0]  (%p766_p5), %s854_s14, 128, %s850_s25, %s391_s30  }
 0x2e6 PF: > { %p554_p7 = scmp.ge.s32.totalorder %s691_s21, 2  ;;  %s433_s10 = sand.u32 1, %s679_s18  }
 0x2e7   : > { %s434_s17 = scalar_lea.sflag [#allocation3], %s433_s10 }
 0x2e8   : > { %p548_p8 = pnand %p554_p7, %p770_p6 }
 0x2ea   : > { %670 = dma.done.wait (!%p548_p8), %s434_s17, 128  }
 0x2eb   : > { %672 = vsyncadd (!%p548_p8), %s434_s17, 4294967168  ;;  %s443_s16 = scalar_lea.sflag [#allocation5], %s433_s10 }
 0x2ec   : > { %674 = dma.done.wait (!%p548_p8), %s443_s16, 16  }
 0x2ed   : > { %676 = vsyncadd (!%p548_p8), %s443_s16, 4294967280  ;;  %p19_p5 = scmp.ge.s32.totalorder %s753_s24, 6   ;;  %s905_s18 = smov %s683_s19 }
 0x2ee   : > { %s906_s19 = smov %s687_s20  ;;  %s907_s20 = smov %s764_s27 }
 0x2ef   : > { %s908_s21 = smov %s753_s24  ;;  %21 = sbr.rel (!%p19_p5) target bundleno = 5 (0x5), region = 91 }
 0x2f6   :  { %447 = vsyncpa [#allocation3], 1 }
 0x2f7   :  { %449 = vsyncpa [#allocation3 + $0x1], 1 }
 0x2f8   :  { %450 = vsyncpa [#allocation5], 1 }
 0x2f9   :  { %452 = vsyncpa [#allocation5 + $0x1], 1 }

</bundles_post_ra>
